<compile_context>
chip_gen: v5e
topology: v5e:2x2
jax: 0.10.0
libtpu: 0.0.40
codegen_flags: <defaults>
</compile_context>

<pallas_src>
import functools

import numpy as np
import jax
import jax.numpy as jnp
from jax.experimental import pallas as pl
from jax.experimental.pallas import tpu as pltpu

LANE = 128  # lane-dense padding for all feature dimensions


# ----------------------------- Pallas kernel --------------------------------

def _fused_gcn_kernel(a_ref, x_ref, w_pre_ref, b_pre_ref,
                      w_conv_ref, b_conv_ref, w_post_ref, b_post_ref,
                      o_ref, *, num_convs):
    """Fused forward: pre-MLP -> (GCNConv [+BN+ReLU]) x L -> post-MLP."""
    f32 = jnp.float32
    a = a_ref[...]          # (N, N) dense normalized adjacency
    h = x_ref[...]          # (N, 128) node features (padded lanes are zero)

    # pre-processing MLP: Linear -> ReLU -> Linear -> ReLU  (Dropout = id)
    for l in range(2):
        h = jnp.dot(h, w_pre_ref[l], preferred_element_type=f32) + b_pre_ref[l]
        h = jnp.maximum(h, 0.0)

    # GCN stack; eval-BatchNorm is pre-folded into W/b of the hidden convs.
    for l in range(num_convs):
        hw = jnp.dot(h, w_conv_ref[l], preferred_element_type=f32)
        h = jnp.dot(a, hw, preferred_element_type=f32) + b_conv_ref[l]
        if l < num_convs - 1:           # last conv: no BN / no ReLU
            h = jnp.maximum(h, 0.0)

    # post-processing MLP: Linear -> ReLU -> Linear
    h = jnp.maximum(
        jnp.dot(h, w_post_ref[0], preferred_element_type=f32) + b_post_ref[0],
        0.0)
    h = jnp.dot(h, w_post_ref[1], preferred_element_type=f32) + b_post_ref[1]

    o_ref[...] = h.astype(o_ref.dtype)  # (N, 128) lane-dense store


# ------------------------------ wrapper --------------------------------------

def _full_spec(shape):
    ndim = len(shape)
    return pl.BlockSpec(shape, lambda i, _nd=ndim: (0,) * _nd)


def fused_forward(a_hat, x_pad, w_pre, b_pre, w_conv, b_conv, w_post, b_post):
    n = x_pad.shape[0]
    num_convs = w_conv.shape[0]
    kern = functools.partial(_fused_gcn_kernel, num_convs=num_convs)
    return pl.pallas_call(
        kern,
        out_shape=jax.ShapeDtypeStruct((n, LANE), jnp.float32),
        grid=(1,),
        in_specs=[_full_spec(a_hat.shape),
                  _full_spec(x_pad.shape),
                  _full_spec(w_pre.shape),
                  _full_spec(b_pre.shape),
                  _full_spec(w_conv.shape),
                  _full_spec(b_conv.shape),
                  _full_spec(w_post.shape),
                  _full_spec(b_post.shape)],
        out_specs=_full_spec((n, LANE)),
        compiler_params=pltpu.CompilerParams(
            dimension_semantics=("arbitrary",)),
    )(a_hat, x_pad, w_pre, b_pre, w_conv, b_conv, w_post, b_post)


# --------------------------- model construction ------------------------------

def gcn_normalize(edge_index, num_nodes):
    """Dense A_hat = D^{-1/2}(A+I)D^{-1/2} (PyG gcn_norm, symmetric edges)."""
    src, dst = edge_index
    a = jnp.zeros((num_nodes, num_nodes), jnp.float32)
    a = a.at[dst, src].set(1.0)                      # A[i, j] = 1 for edge j -> i
    a = a + jnp.eye(num_nodes, dtype=jnp.float32)    # add self loops
    deg = a.sum(axis=1)
    dinv = jnp.where(deg > 0, 1.0 / jnp.sqrt(deg), 0.0)
    return a * dinv[:, None] * dinv[None, :]


def init_params(key, dim_in, hidden, dim_out, num_hid_layers):
    ks = jax.random.split(key, 32)
    k = iter(range(32))

    def lin(kin, kout):
        w = jax.random.normal(ks[next(k)], (kin, kout), jnp.float32) * 0.1
        b = jax.random.normal(ks[next(k)], (kout,), jnp.float32) * 0.01
        return w, b

    params = {
        "pre": [lin(dim_in, hidden), lin(hidden, hidden)],
        "post": [lin(hidden, hidden), lin(hidden, dim_out)],
        "convs": [],
        "bns": [],
    }
    for _ in range(num_hid_layers):                  # conv_in = conv_out = hidden
        params["convs"].append(lin(hidden, hidden))
    for _ in range(num_hid_layers - 1):
        params["bns"].append({
            "gamma": jnp.ones((hidden,), jnp.float32),
            "beta": jnp.zeros((hidden,), jnp.float32),
            "mean": jnp.zeros((hidden,), jnp.float32),
            "var": jnp.ones((hidden,), jnp.float32),
        })
    return params


def pack_params(params, eps=1e-5):
    """One-time host-side transform: fold eval-BN into conv weights and pad
    every feature dim to 128 lanes (zeros) so the kernel is lane-dense."""

    def pad2(w):
        out = jnp.zeros((LANE, LANE), jnp.float32)
        return out.at[:w.shape[0], :w.shape[1]].set(w)

    def pad1(b):
        out = jnp.zeros((1, LANE), jnp.float32)
        return out.at[0, :b.shape[0]].set(b)

    w_pre = jnp.stack([pad2(w) for (w, _) in params["pre"]])
    b_pre = jnp.stack([pad1(b) for (_, b) in params["pre"]])

    conv_w, conv_b = [], []
    for (w, b), bn in zip(params["convs"][:-1], params["bns"]):
        scale = bn["gamma"] / jnp.sqrt(bn["var"] + eps)
        shift = bn["beta"] - bn["mean"] * scale
        conv_w.append(pad2(w * scale[None, :]))
        conv_b.append(pad1(b * scale + shift))
    w_last, b_last = params["convs"][-1]
    conv_w.append(pad2(w_last))
    conv_b.append(pad1(b_last))
    w_conv = jnp.stack(conv_w)
    b_conv = jnp.stack(conv_b)

    w_post = jnp.stack([pad2(w) for (w, _) in params["post"]])
    b_post = jnp.stack([pad1(b) for (_, b) in params["post"]])
    return w_pre, b_pre, w_conv, b_conv, w_post, b_post


def custom_node_gcn_forward(params, x, a_hat, dim_out):
    n, dim_in = x.shape
    x_pad = jnp.zeros((n, LANE), jnp.float32).at[:, :dim_in].set(x)
    packed = pack_params(params)
    out_pad = fused_forward(a_hat, x_pad, *packed)
    return out_pad[:, :dim_out]


# ---------------------------------- main --------------------------------------

if __name__ == "__main__":
    # small, deterministic problem
    N, DIM_IN, HIDDEN, DIM_OUT = 16, 8, 32, 4
    NUM_HID_LAYERS = 2                     # minimum allowed by the module

    key = jax.random.PRNGKey(0)
    kx, ky, kp = jax.random.split(key, 3)

    x = jax.random.normal(kx, (N, DIM_IN), jnp.float32)
    y = jax.random.randint(ky, (N,), 0, DIM_OUT, jnp.int32)

    # deterministic symmetric graph: ring + a few chords
    src_np = np.array([i for i in range(N)] + [0, 3, 5, 7], dtype=np.int32)
    dst_np = np.array([(i + 1) % N for i in range(N)] + [8, 11, 13, 2],
                      dtype=np.int32)
    src = np.concatenate([src_np, dst_np])
    dst = np.concatenate([dst_np, src_np])
    edge_index = jnp.stack([jnp.asarray(src), jnp.asarray(dst)], axis=0)

    a_hat = gcn_normalize(edge_index, N)
    params = init_params(kp, DIM_IN, HIDDEN, DIM_OUT, NUM_HID_LAYERS)

    out = custom_node_gcn_forward(params, x, a_hat, DIM_OUT)

    # _apply_index: batch.split = "train"; boolean mask -> static index gather
    # (mask is built in-script, so the dynamic-shape boolean indexing of the
    # PyTorch code is resolved to a static gather here).
    train_idx = jnp.asarray(np.arange(N // 2, dtype=np.int32))  # first half = train
    pred = out[train_idx]
    label = y[train_idx]

    jax.block_until_ready((pred, label))
    assert pred.shape == (N // 2, DIM_OUT) and label.shape == (N // 2,)
    print("KERNEL_OK")
</pallas_src>

<mosaic_0001>
module attributes {stable_mosaic.version = 11 : i64} {
  func.func @_fused_gcn_kernel(%arg0: i32, %arg1: memref<16x16xf32, #tpu.memory_space<vmem>>, %arg2: memref<16x128xf32, #tpu.memory_space<vmem>>, %arg3: memref<2x128x128xf32, #tpu.memory_space<vmem>>, %arg4: memref<2x1x128xf32, #tpu.memory_space<vmem>>, %arg5: memref<2x128x128xf32, #tpu.memory_space<vmem>>, %arg6: memref<2x1x128xf32, #tpu.memory_space<vmem>>, %arg7: memref<2x128x128xf32, #tpu.memory_space<vmem>>, %arg8: memref<2x1x128xf32, #tpu.memory_space<vmem>>, %arg9: memref<16x128xf32, #tpu.memory_space<vmem>>) attributes {dimension_semantics = [#tpu.dimension_semantics<arbitrary>], iteration_bounds = array<i64: 1>, scalar_prefetch = 0 : i64, scratch_operands = 0 : i64, tpu.core_type = #tpu.core_type<tc>, window_params = [{pipeline_mode = #tpu.pipeline_mode<synchronous>, transform_indices = @transform_0, window_bounds = array<i64: 16, 16>}, {pipeline_mode = #tpu.pipeline_mode<synchronous>, transform_indices = @transform_1, window_bounds = array<i64: 16, 128>}, {pipeline_mode = #tpu.pipeline_mode<synchronous>, transform_indices = @transform_2, window_bounds = array<i64: 2, 128, 128>}, {pipeline_mode = #tpu.pipeline_mode<synchronous>, transform_indices = @transform_3, window_bounds = array<i64: 2, 1, 128>}, {pipeline_mode = #tpu.pipeline_mode<synchronous>, transform_indices = @transform_4, window_bounds = array<i64: 2, 128, 128>}, {pipeline_mode = #tpu.pipeline_mode<synchronous>, transform_indices = @transform_5, window_bounds = array<i64: 2, 1, 128>}, {pipeline_mode = #tpu.pipeline_mode<synchronous>, transform_indices = @transform_6, window_bounds = array<i64: 2, 128, 128>}, {pipeline_mode = #tpu.pipeline_mode<synchronous>, transform_indices = @transform_7, window_bounds = array<i64: 2, 1, 128>}, {pipeline_mode = #tpu.pipeline_mode<synchronous>, transform_indices = @transform_8, window_bounds = array<i64: 16, 128>}]} {
    %c0 = arith.constant 0 : index
    %c0_0 = arith.constant 0 : index
    %0 = vector.load %arg1[%c0, %c0_0] : memref<16x16xf32, #tpu.memory_space<vmem>>, vector<16x16xf32>
    %c0_1 = arith.constant 0 : index
    %c0_2 = arith.constant 0 : index
    %1 = vector.load %arg2[%c0_1, %c0_2] : memref<16x128xf32, #tpu.memory_space<vmem>>, vector<16x128xf32>
    %c0_3 = arith.constant 0 : index
    %c0_4 = arith.constant 0 : index
    %c0_5 = arith.constant 0 : index
    %2 = vector.load %arg3[%c0_3, %c0_4, %c0_5] : memref<2x128x128xf32, #tpu.memory_space<vmem>>, vector<1x128x128xf32>
    %3 = vector.shape_cast %2 : vector<1x128x128xf32> to vector<128x128xf32>
    %cst = arith.constant dense<0.000000e+00> : vector<16x128xf32>
    %4 = tpu.matmul %1, %3, %cst {dimension_numbers = #tpu.dot_dimension_numbers<[1], [0], [0], [1], [0, 0, 1, 1], [], []>} : vector<16x128xf32>, vector<128x128xf32>, vector<16x128xf32> -> vector<16x128xf32>
    %c0_6 = arith.constant 0 : index
    %c0_7 = arith.constant 0 : index
    %c0_8 = arith.constant 0 : index
    %5 = vector.load %arg4[%c0_6, %c0_7, %c0_8] : memref<2x1x128xf32, #tpu.memory_space<vmem>>, vector<1x1x128xf32>
    %6 = vector.shape_cast %5 : vector<1x1x128xf32> to vector<1x128xf32>
    %7 = vector.broadcast %6 : vector<1x128xf32> to vector<16x128xf32>
    %8 = arith.addf %4, %7 : vector<16x128xf32>
    %cst_9 = arith.constant 0.000000e+00 : f32
    %9 = vector.broadcast %cst_9 : f32 to vector<16x128xf32>
    %10 = arith.maximumf %8, %9 : vector<16x128xf32>
    %c1 = arith.constant 1 : index
    %c0_10 = arith.constant 0 : index
    %c0_11 = arith.constant 0 : index
    %11 = vector.load %arg3[%c1, %c0_10, %c0_11] : memref<2x128x128xf32, #tpu.memory_space<vmem>>, vector<1x128x128xf32>
    %12 = vector.shape_cast %11 : vector<1x128x128xf32> to vector<128x128xf32>
    %cst_12 = arith.constant dense<0.000000e+00> : vector<16x128xf32>
    %13 = tpu.matmul %10, %12, %cst_12 {dimension_numbers = #tpu.dot_dimension_numbers<[1], [0], [0], [1], [0, 0, 1, 1], [], []>} : vector<16x128xf32>, vector<128x128xf32>, vector<16x128xf32> -> vector<16x128xf32>
    %c1_13 = arith.constant 1 : index
    %c0_14 = arith.constant 0 : index
    %c0_15 = arith.constant 0 : index
    %14 = vector.load %arg4[%c1_13, %c0_14, %c0_15] : memref<2x1x128xf32, #tpu.memory_space<vmem>>, vector<1x1x128xf32>
    %15 = vector.shape_cast %14 : vector<1x1x128xf32> to vector<1x128xf32>
    %16 = vector.broadcast %15 : vector<1x128xf32> to vector<16x128xf32>
    %17 = arith.addf %13, %16 : vector<16x128xf32>
    %cst_16 = arith.constant 0.000000e+00 : f32
    %18 = vector.broadcast %cst_16 : f32 to vector<16x128xf32>
    %19 = arith.maximumf %17, %18 : vector<16x128xf32>
    %c0_17 = arith.constant 0 : index
    %c0_18 = arith.constant 0 : index
    %c0_19 = arith.constant 0 : index
    %20 = vector.load %arg5[%c0_17, %c0_18, %c0_19] : memref<2x128x128xf32, #tpu.memory_space<vmem>>, vector<1x128x128xf32>
    %21 = vector.shape_cast %20 : vector<1x128x128xf32> to vector<128x128xf32>
    %cst_20 = arith.constant dense<0.000000e+00> : vector<16x128xf32>
    %22 = tpu.matmul %19, %21, %cst_20 {dimension_numbers = #tpu.dot_dimension_numbers<[1], [0], [0], [1], [0, 0, 1, 1], [], []>} : vector<16x128xf32>, vector<128x128xf32>, vector<16x128xf32> -> vector<16x128xf32>
    %cst_21 = arith.constant dense<0.000000e+00> : vector<16x128xf32>
    %23 = tpu.matmul %0, %22, %cst_21 {dimension_numbers = #tpu.dot_dimension_numbers<[1], [0], [0], [1], [0, 0, 1, 1], [], []>} : vector<16x16xf32>, vector<16x128xf32>, vector<16x128xf32> -> vector<16x128xf32>
    %c0_22 = arith.constant 0 : index
    %c0_23 = arith.constant 0 : index
    %c0_24 = arith.constant 0 : index
    %24 = vector.load %arg6[%c0_22, %c0_23, %c0_24] : memref<2x1x128xf32, #tpu.memory_space<vmem>>, vector<1x1x128xf32>
    %25 = vector.shape_cast %24 : vector<1x1x128xf32> to vector<1x128xf32>
    %26 = vector.broadcast %25 : vector<1x128xf32> to vector<16x128xf32>
    %27 = arith.addf %23, %26 : vector<16x128xf32>
    %cst_25 = arith.constant 0.000000e+00 : f32
    %28 = vector.broadcast %cst_25 : f32 to vector<16x128xf32>
    %29 = arith.maximumf %27, %28 : vector<16x128xf32>
    %c1_26 = arith.constant 1 : index
    %c0_27 = arith.constant 0 : index
    %c0_28 = arith.constant 0 : index
    %30 = vector.load %arg5[%c1_26, %c0_27, %c0_28] : memref<2x128x128xf32, #tpu.memory_space<vmem>>, vector<1x128x128xf32>
    %31 = vector.shape_cast %30 : vector<1x128x128xf32> to vector<128x128xf32>
    %cst_29 = arith.constant dense<0.000000e+00> : vector<16x128xf32>
    %32 = tpu.matmul %29, %31, %cst_29 {dimension_numbers = #tpu.dot_dimension_numbers<[1], [0], [0], [1], [0, 0, 1, 1], [], []>} : vector<16x128xf32>, vector<128x128xf32>, vector<16x128xf32> -> vector<16x128xf32>
    %cst_30 = arith.constant dense<0.000000e+00> : vector<16x128xf32>
    %33 = tpu.matmul %0, %32, %cst_30 {dimension_numbers = #tpu.dot_dimension_numbers<[1], [0], [0], [1], [0, 0, 1, 1], [], []>} : vector<16x16xf32>, vector<16x128xf32>, vector<16x128xf32> -> vector<16x128xf32>
    %c1_31 = arith.constant 1 : index
    %c0_32 = arith.constant 0 : index
    %c0_33 = arith.constant 0 : index
    %34 = vector.load %arg6[%c1_31, %c0_32, %c0_33] : memref<2x1x128xf32, #tpu.memory_space<vmem>>, vector<1x1x128xf32>
    %35 = vector.shape_cast %34 : vector<1x1x128xf32> to vector<1x128xf32>
    %36 = vector.broadcast %35 : vector<1x128xf32> to vector<16x128xf32>
    %37 = arith.addf %33, %36 : vector<16x128xf32>
    %c0_34 = arith.constant 0 : index
    %c0_35 = arith.constant 0 : index
    %c0_36 = arith.constant 0 : index
    %38 = vector.load %arg7[%c0_34, %c0_35, %c0_36] : memref<2x128x128xf32, #tpu.memory_space<vmem>>, vector<1x128x128xf32>
    %39 = vector.shape_cast %38 : vector<1x128x128xf32> to vector<128x128xf32>
    %cst_37 = arith.constant dense<0.000000e+00> : vector<16x128xf32>
    %40 = tpu.matmul %37, %39, %cst_37 {dimension_numbers = #tpu.dot_dimension_numbers<[1], [0], [0], [1], [0, 0, 1, 1], [], []>} : vector<16x128xf32>, vector<128x128xf32>, vector<16x128xf32> -> vector<16x128xf32>
    %c0_38 = arith.constant 0 : index
    %c0_39 = arith.constant 0 : index
    %c0_40 = arith.constant 0 : index
    %41 = vector.load %arg8[%c0_38, %c0_39, %c0_40] : memref<2x1x128xf32, #tpu.memory_space<vmem>>, vector<1x1x128xf32>
    %42 = vector.shape_cast %41 : vector<1x1x128xf32> to vector<1x128xf32>
    %43 = vector.broadcast %42 : vector<1x128xf32> to vector<16x128xf32>
    %44 = arith.addf %40, %43 : vector<16x128xf32>
    %cst_41 = arith.constant 0.000000e+00 : f32
    %45 = vector.broadcast %cst_41 : f32 to vector<16x128xf32>
    %46 = arith.maximumf %44, %45 : vector<16x128xf32>
    %c1_42 = arith.constant 1 : index
    %c0_43 = arith.constant 0 : index
    %c0_44 = arith.constant 0 : index
    %47 = vector.load %arg7[%c1_42, %c0_43, %c0_44] : memref<2x128x128xf32, #tpu.memory_space<vmem>>, vector<1x128x128xf32>
    %48 = vector.shape_cast %47 : vector<1x128x128xf32> to vector<128x128xf32>
    %cst_45 = arith.constant dense<0.000000e+00> : vector<16x128xf32>
    %49 = tpu.matmul %46, %48, %cst_45 {dimension_numbers = #tpu.dot_dimension_numbers<[1], [0], [0], [1], [0, 0, 1, 1], [], []>} : vector<16x128xf32>, vector<128x128xf32>, vector<16x128xf32> -> vector<16x128xf32>
    %c1_46 = arith.constant 1 : index
    %c0_47 = arith.constant 0 : index
    %c0_48 = arith.constant 0 : index
    %50 = vector.load %arg8[%c1_46, %c0_47, %c0_48] : memref<2x1x128xf32, #tpu.memory_space<vmem>>, vector<1x1x128xf32>
    %51 = vector.shape_cast %50 : vector<1x1x128xf32> to vector<1x128xf32>
    %52 = vector.broadcast %51 : vector<1x128xf32> to vector<16x128xf32>
    %53 = arith.addf %49, %52 : vector<16x128xf32>
    %c0_49 = arith.constant 0 : index
    %c0_50 = arith.constant 0 : index
    %54 = vector.load %arg9[%c0_49, %c0_50] : memref<16x128xf32, #tpu.memory_space<vmem>>, vector<16x128xf32>
    tpu.vector_store %arg9[%c0_49, %c0_50], %53 {strides = array<i32>} : memref<16x128xf32, #tpu.memory_space<vmem>>, vector<16x128xf32>,
    return
  }
  func.func @transform_0(%arg0: i32) -> (i32, i32) {
    %c0_i32 = arith.constant 0 : i32
    %c0_i32_0 = arith.constant 0 : i32
    %c0_i32_1 = arith.constant 0 : i32
    return %c0_i32, %c0_i32_0 : i32, i32
  }
  func.func @transform_1(%arg0: i32) -> (i32, i32) {
    %c0_i32 = arith.constant 0 : i32
    %c0_i32_0 = arith.constant 0 : i32
    %c0_i32_1 = arith.constant 0 : i32
    return %c0_i32, %c0_i32_0 : i32, i32
  }
  func.func @transform_2(%arg0: i32) -> (i32, i32, i32) {
    %c0_i32 = arith.constant 0 : i32
    %c0_i32_0 = arith.constant 0 : i32
    %c0_i32_1 = arith.constant 0 : i32
    %c0_i32_2 = arith.constant 0 : i32
    return %c0_i32, %c0_i32_0, %c0_i32_1 : i32, i32, i32
  }
  func.func @transform_3(%arg0: i32) -> (i32, i32, i32) {
    %c0_i32 = arith.constant 0 : i32
    %c0_i32_0 = arith.constant 0 : i32
    %c0_i32_1 = arith.constant 0 : i32
    %c0_i32_2 = arith.constant 0 : i32
    return %c0_i32, %c0_i32_0, %c0_i32_1 : i32, i32, i32
  }
  func.func @transform_4(%arg0: i32) -> (i32, i32, i32) {
    %c0_i32 = arith.constant 0 : i32
    %c0_i32_0 = arith.constant 0 : i32
    %c0_i32_1 = arith.constant 0 : i32
    %c0_i32_2 = arith.constant 0 : i32
    return %c0_i32, %c0_i32_0, %c0_i32_1 : i32, i32, i32
  }
  func.func @transform_5(%arg0: i32) -> (i32, i32, i32) {
    %c0_i32 = arith.constant 0 : i32
    %c0_i32_0 = arith.constant 0 : i32
    %c0_i32_1 = arith.constant 0 : i32
    %c0_i32_2 = arith.constant 0 : i32
    return %c0_i32, %c0_i32_0, %c0_i32_1 : i32, i32, i32
  }
  func.func @transform_6(%arg0: i32) -> (i32, i32, i32) {
    %c0_i32 = arith.constant 0 : i32
    %c0_i32_0 = arith.constant 0 : i32
    %c0_i32_1 = arith.constant 0 : i32
    %c0_i32_2 = arith.constant 0 : i32
    return %c0_i32, %c0_i32_0, %c0_i32_1 : i32, i32, i32
  }
  func.func @transform_7(%arg0: i32) -> (i32, i32, i32) {
    %c0_i32 = arith.constant 0 : i32
    %c0_i32_0 = arith.constant 0 : i32
    %c0_i32_1 = arith.constant 0 : i32
    %c0_i32_2 = arith.constant 0 : i32
    return %c0_i32, %c0_i32_0, %c0_i32_1 : i32, i32, i32
  }
  func.func @transform_8(%arg0: i32) -> (i32, i32) {
    %c0_i32 = arith.constant 0 : i32
    %c0_i32_0 = arith.constant 0 : i32
    %c0_i32_1 = arith.constant 0 : i32
    return %c0_i32, %c0_i32_0 : i32, i32
  }
}

</mosaic_0001>

<bundles_post_ra>
// kernel: tpu_custom_call.1
= control target key start
LH: loop header
LB: loop body
LE: loop exit
PB: predicated region body
PF: predicated region fallthrough
CT: control target
= control target key end

     0   :  { %13 = vsyncpa [#allocation3], 0  ;;  %s768_s0 = inlined_call_operand.hbm [shape: f32[16,16], index: 0, kind: input, shape index: {}]   ;;  %s769_s1 = inlined_call_operand.hbm [shape: f32[16,128], index: 1, kind: input, shape index: {}]   ;;  %s770_s2 = inlined_call_operand.hbm [shape: f32[2,128,128], index: 2, kind: input, shape index: {}]   ;;  %s771_s3 = inlined_call_operand.vmem [shape: f32[2,1,128], index: 3, kind: input, shape index: {}]   ;;  %s772_s4 = inlined_call_operand.hbm [shape: f32[2,128,128], index: 4, kind: input, shape index: {}]   ;;  %s773_s5 = inlined_call_operand.vmem [shape: f32[2,1,128], index: 5, kind: input, shape index: {}]   ;;  %s774_s6 = inlined_call_operand.hbm [shape: f32[2,128,128], index: 6, kind: input, shape index: {}]   ;;  %s775_s7 = inlined_call_operand.vmem [shape: f32[2,1,128], index: 7, kind: input, shape index: {}]   ;;  %s776_s8 = inlined_call_operand.hbm [shape: f32[16,128], index: 8, kind: output, shape index: {}]  }
   0x1   :  { %14 = vsyncpa [#allocation6], 0 }
   0x2   :  { %15 = vsyncpa [#allocation9], 0 }
   0x3   :  { %16 = vsyncpa [#allocation4], 0  ;;  %s34_s29 = sshll.u32 %s769_s1, 4  ;;  %s649_s30 = smov [#allocation5]   ;;  %s35_s29 = int_to_ptr.hbm [resolvable:$true] %s34_s29 }
   0x4   :  { %s36_s9 = sshll.u32 %s649_s30, 4  ;;  %s62_s12 = sshll.u32 %s772_s4, 4  ;;  %s37_s9 = int_to_ptr.vmem [resolvable:$true] %s36_s9  ;;  %s63_s12 = int_to_ptr.hbm [resolvable:$true] %s62_s12 }
   0x5   :  { %s650_s13 = smov 128   ;;  %s651_s14 = smov 8  }
   0x6   :  { %42 = dma.hbm_to_vmem [thread:$0]  %s35_s29, 256, %s37_s9, [#allocation6], %s650_s13, %s650_s13, %s651_s14  }
   0x7   :  { %s652_s15 = smov [#allocation8]   ;;  %s21_s1 = sshll.u32 %s768_s0, 4  ;;  %s22_s1 = int_to_ptr.hbm [resolvable:$true] %s21_s1 }
   0x8   :  { %s64_s16 = sshll.u32 %s652_s15, 4  ;;  %s47_s20 = sshll.u32 %s770_s2, 4  ;;  %s65_s16 = int_to_ptr.vmem [resolvable:$true] %s64_s16  ;;  %s48_s20 = int_to_ptr.hbm [resolvable:$true] %s47_s20 }
   0x9   :  { %70 = dma.hbm_to_vmem [thread:$0]  %s63_s12, 4096, %s65_s16, [#allocation9], %s650_s13, %s650_s13, %s651_s14  }
   0xa   :  { %s653_s21 = smov [#allocation2]   ;;  %s654_s23 = smov [#allocation7]  }
   0xb   :  { %s23_s22 = sshll.u32 %s653_s21, 4  ;;  %s49_s0 = sshll.u32 %s654_s23, 4  ;;  %s24_s22 = int_to_ptr.vmem [resolvable:$true] %s23_s22  ;;  %s50_s0 = int_to_ptr.vmem [resolvable:$true] %s49_s0 }
   0xc   :  { %29 = dma.hbm_to_vmem [thread:$0]  %s22_s1, 256, %s24_s22, [#allocation3], %s650_s13, %s650_s13, %s651_s14  }
   0xd   :  { %s77_s26 = sshll.u32 %s774_s6, 4  ;;  %s655_s2 = smov [#allocation10]   ;;  %s78_s26 = int_to_ptr.hbm [resolvable:$true] %s77_s26 }
   0xe   :  { %55 = dma.hbm_to_vmem [thread:$0]  %s48_s20, 4096, %s50_s0, [#allocation6], %s650_s13, %s650_s13, %s651_s14  }
   0xf   :  { %s79_s27 = sshll.u32 %s655_s2, 4  ;;  %s80_s27 = int_to_ptr.vmem [resolvable:$true] %s79_s27 }
  0x10   :  { %85 = dma.hbm_to_vmem [thread:$0]  %s78_s26, 4096, %s80_s27, [#allocation9], %s650_s13, %s650_s13, %s651_s14  }
  0x11   :  { %641 = dma.done.wait [#allocation3], 256  }
  0x12   :  { %642 = vsyncadd [#allocation3], 4294967040 }
  0x13   :  { %643 = dma.done.wait [#allocation6], 4352  }
  0x14   :  { %644 = vsyncadd [#allocation6], 4294962944 }
  0x15   :  { %645 = dma.done.wait [#allocation9], 8192  }
  0x16   :  { %646 = vsyncadd [#allocation9], 4294959104  ;;  %v127_v0 = vld [vmem:[#allocation7 + $0x78] sm:$0xff]  ;;  %v126_v1 = vld [vmem:[#allocation7 + $0x70] sm:$0xff]  ;;  %vm247_vm0 = vcmask 130048   ;;  %s656_s17 = smov [#allocation11]  }
  0x17   :  { %132 = vmatpush.msra.mxu0 %v127_v0  ;;  %v125_v2 = vld [vmem:[#allocation7 + $0x68] sm:$0xff]  ;;  %v124_v3 = vld [vmem:[#allocation7 + $0x60] sm:$0xff]  ;;  %v123_v4 = vld [vmem:[#allocation7 + $0x58] sm:$0xff]  ;;  %s443_s18 = sshll.u32 %s656_s17, 4  ;;  %s445_s19 = sshll.u32 %s776_s8, 4  ;;  %s444_s18 = int_to_ptr.vmem [resolvable:$true] %s443_s18  ;;  %s446_s19 = int_to_ptr.hbm [resolvable:$true] %s445_s19 }
  0x18   :  { %v122_v5 = vld [vmem:[#allocation7 + $0x50] sm:$0xff]  ;;  %v173_v6 = vld [vmem:[#allocation7 + $0xf8] sm:$0xff]  ;;  %v121_v8 = vld [vmem:[#allocation7 + $0x48] sm:$0xff] }
  0x19   :  { %133 = vmatpush.msra.mxu0 %v126_v1  ;;  %v172_v7 = vld [vmem:[#allocation7 + $0xf0] sm:$0xff]  ;;  %179 = vmatpush.msra.mxu1 %v173_v6  ;;  %v171_v9 = vld [vmem:[#allocation7 + $0xe8] sm:$0xff]  ;;  %v120_v10 = vld [vmem:[#allocation7 + $0x40] sm:$0xff] }
  0x1a   :  { %v170_v11 = vld [vmem:[#allocation7 + $0xe0] sm:$0xff]  ;;  %v119_v12 = vld [vmem:[#allocation7 + $0x38] sm:$0xff]  ;;  %v118_v14 = vld [vmem:[#allocation7 + $0x30] sm:$0xff] }
  0x1b   :  { %134 = vmatpush.msra.mxu0 %v125_v2  ;;  %180 = vmatpush.msra.mxu1 %v172_v7  ;;  %v169_v13 = vld [vmem:[#allocation7 + $0xd8] sm:$0xff]  ;;  %v168_v15 = vld [vmem:[#allocation7 + $0xd0] sm:$0xff]  ;;  %v117_v16 = vld [vmem:[#allocation7 + $0x28] sm:$0xff] }
  0x1c   :  { %v167_v17 = vld [vmem:[#allocation7 + $0xc8] sm:$0xff]  ;;  %v116_v18 = vld [vmem:[#allocation7 + $0x20] sm:$0xff]  ;;  %v115_v20 = vld [vmem:[#allocation7 + $0x18] sm:$0xff] }
  0x1d   :  { %135 = vmatpush.msra.mxu0 %v124_v3  ;;  %181 = vmatpush.msra.mxu1 %v171_v9  ;;  %v166_v19 = vld [vmem:[#allocation7 + $0xc0] sm:$0xff]  ;;  %v165_v21 = vld [vmem:[#allocation7 + $0xb8] sm:$0xff]  ;;  %v114_v22 = vld [vmem:[#allocation7 + $0x10] sm:$0xff] }
  0x1e   :  { %v164_v23 = vld [vmem:[#allocation7 + $0xb0] sm:$0xff]  ;;  %v113_v24 = vld [vmem:[#allocation7 + $0x8] sm:$0xff]  ;;  %v112_v26 = vld [vmem:[#allocation7] sm:$0xff] }
  0x1f   :  { %136 = vmatpush.msra.mxu0 %v123_v4  ;;  %182 = vmatpush.msra.mxu1 %v170_v11  ;;  %v163_v25 = vld [vmem:[#allocation7 + $0xa8] sm:$0xff]  ;;  %v162_v27 = vld [vmem:[#allocation7 + $0xa0] sm:$0xff]  ;;  %v110_v28 = vld [vmem:[#allocation5] sm:$0xff] }
  0x20   :  { %v161_v29 = vld [vmem:[#allocation7 + $0x98] sm:$0xff]  ;;  %v160_v31 = vld [vmem:[#allocation7 + $0x90] sm:$0xff]  ;;  %v159_v32 = vld [vmem:[#allocation7 + $0x88] sm:$0xff] }
  0x21   :  { %137 = vmatpush.msra.mxu0 %v122_v5  ;;  %183 = vmatpush.msra.mxu1 %v169_v13  ;;  %v111_v30 = vld [vmem:[#allocation5 + $0x8] sm:$0xff]  ;;  %v158_v33 = vld [vmem:[#allocation7 + $0x80] sm:$0xff]  ;;  %v218_v35 = vld [vmem:[#allocation8 + $0x70] sm:$0xff] }
  0x22   :  { %v219_v34 = vld [vmem:[#allocation8 + $0x78] sm:$0xff]  ;;  %v217_v36 = vld [vmem:[#allocation8 + $0x68] sm:$0xff]  ;;  %v216_v37 = vld [vmem:[#allocation8 + $0x60] sm:$0xff] }
  0x23   :  { %138 = vmatpush.msra.mxu0 %v121_v8  ;;  %184 = vmatpush.msra.mxu1 %v168_v15  ;;  %v215_v38 = vld [vmem:[#allocation8 + $0x58] sm:$0xff]  ;;  %v214_v39 = vld [vmem:[#allocation8 + $0x50] sm:$0xff]  ;;  %v213_v40 = vld [vmem:[#allocation8 + $0x48] sm:$0xff] }
  0x24   :  { %220 = vmatpush.msra.mxu2 %v219_v34  ;;  %v212_v41 = vld [vmem:[#allocation8 + $0x40] sm:$0xff]  ;;  %v211_v42 = vld [vmem:[#allocation8 + $0x38] sm:$0xff]  ;;  %v210_v44 = vld [vmem:[#allocation8 + $0x30] sm:$0xff] }
  0x25   :  { %139 = vmatpush.msra.mxu0 %v120_v10  ;;  %185 = vmatpush.msra.mxu1 %v167_v17  ;;  %v491_v43 = vld [vmem:[%s771_s3] ss:$0 sm:$0xff]  ;;  %v209_v45 = vld [vmem:[#allocation8 + $0x28] sm:$0xff]  ;;  %v207_v50 = vld [vmem:[#allocation8 + $0x18] sm:$0xff] }
  0x26   :  { %221 = vmatpush.msra.mxu2 %v218_v35  ;;  %v208_v48 = vld [vmem:[#allocation8 + $0x20] sm:$0xff]  ;;  %v206_v54 = vld [vmem:[#allocation8 + $0x10] sm:$0xff]  ;;  %v205_v55 = vld [vmem:[#allocation8 + $0x8] sm:$0xff] }
  0x27   :  { %140 = vmatpush.msra.mxu0 %v119_v12  ;;  %186 = vmatpush.msra.mxu1 %v166_v19  ;;  %v204_v56 = vld [vmem:[#allocation8] sm:$0xff]  ;;  %v295_v3 = vld [vmem:[#allocation8 + $0xf8] sm:$0xff]  ;;  %v294_v4 = vld [vmem:[#allocation8 + $0xf0] sm:$0xff] }
  0x28   :  { %222 = vmatpush.msra.mxu2 %v217_v36  ;;  %v492_v57 = vld [vmem:[%s771_s3 + $0x1] ss:$0 sm:$0xff]  ;;  %v293_v5 = vld [vmem:[#allocation8 + $0xe8] sm:$0xff]  ;;  %v291_v8 = vld [vmem:[#allocation8 + $0xd8] sm:$0xff] }
  0x29   :  { %141 = vmatpush.msra.mxu0 %v118_v14  ;;  %187 = vmatpush.msra.mxu1 %v165_v21  ;;  %v738_v2 = vld [vmem:[#allocation2] sm:$0xff]  ;;  %v742_v7 = vld [vmem:[#allocation2 + $0x8] sm:$0xff]  ;;  %v290_v9 = vld [vmem:[#allocation8 + $0xd0] sm:$0xff] }
  0x2a   :  { %223 = vmatpush.msra.mxu2 %v216_v37  ;;  %v292_v6 = vld [vmem:[#allocation8 + $0xe0] sm:$0xff]  ;;  %v289_v10 = vld [vmem:[#allocation8 + $0xc8] sm:$0xff]  ;;  %v287_v12 = vld [vmem:[#allocation8 + $0xb8] sm:$0xff] }
  0x2b   :  { %142 = vmatpush.msra.mxu0 %v117_v16  ;;  %188 = vmatpush.msra.mxu1 %v164_v23  ;;  %v288_v11 = vld [vmem:[#allocation8 + $0xc0] sm:$0xff]  ;;  %v286_v13 = vld [vmem:[#allocation8 + $0xb0] sm:$0xff]  ;;  %v285_v14 = vld [vmem:[#allocation8 + $0xa8] sm:$0xff] }
  0x2c   :  { %224 = vmatpush.msra.mxu2 %v215_v38  ;;  %v284_v15 = vld [vmem:[#allocation8 + $0xa0] sm:$0xff]  ;;  %v283_v16 = vld [vmem:[#allocation8 + $0x98] sm:$0xff]  ;;  %v282_v17 = vld [vmem:[#allocation8 + $0x90] sm:$0xff] }
  0x2d   :  { %143 = vmatpush.msra.mxu0 %v116_v18  ;;  %189 = vmatpush.msra.mxu1 %v163_v25  ;;  %v281_v18 = vld [vmem:[#allocation8 + $0x88] sm:$0xff]  ;;  %v280_v19 = vld [vmem:[#allocation8 + $0x80] sm:$0xff]  ;;  %v354_v36 = vld [vmem:[#allocation10 + $0x38] sm:$0xff] }
  0x2e   :  { %225 = vmatpush.msra.mxu2 %v214_v39  ;;  %v355_v35 = vld [vmem:[#allocation10 + $0x40] sm:$0xff]  ;;  %v353_v37 = vld [vmem:[#allocation10 + $0x30] sm:$0xff]  ;;  %v352_v38 = vld [vmem:[#allocation10 + $0x28] sm:$0xff] }
  0x2f   :  { %144 = vmatpush.msra.mxu0 %v115_v20  ;;  %190 = vmatpush.msra.mxu1 %v162_v27  ;;  %v493_v20 = vld [vmem:[%s773_s5] ss:$0 sm:$0xff]  ;;  %v362_v27 = vld [vmem:[#allocation10 + $0x78] sm:$0xff] }
  0x30   :  { %226 = vmatpush.msra.mxu2 %v213_v40  ;;  %v351_v40 = vld [vmem:[#allocation10 + $0x20] sm:$0xff] }
  0x31   :  { %145 = vmatpush.msra.mxu0 %v114_v22  ;;  %191 = vmatpush.msra.mxu1 %v161_v29  ;;  %v360_v29 = vld [vmem:[#allocation10 + $0x68] sm:$0xff] }
  0x32   :  { %227 = vmatpush.msra.mxu2 %v212_v41  ;;  %v350_v41 = vld [vmem:[#allocation10 + $0x18] sm:$0xff] }
  0x33   :  { %146 = vmatpush.msra.mxu0 %v113_v24  ;;  %192 = vmatpush.msra.mxu1 %v160_v31  ;;  %v358_v31 = vld [vmem:[#allocation10 + $0x58] sm:$0xff] }
  0x34   :  { %228 = vmatpush.msra.mxu2 %v211_v42  ;;  %v349_v42 = vld [vmem:[#allocation10 + $0x10] sm:$0xff] }
  0x35   :  { %147 = vmatpush.msra.mxu0 %v112_v26  ;;  %193 = vmatpush.msra.mxu1 %v159_v32  ;;  %v357_v32 = vld [vmem:[#allocation10 + $0x50] sm:$0xff] }
  0x36   :  { %148 = vmatmul.f32.vlgmr.msra.gmra.mxu0 %v110_v28  ;;  %229 = vmatpush.msra.mxu2 %v210_v44  ;;  %v361_v28 = vld [vmem:[#allocation10 + $0x70] sm:$0xff]  ;;  %v347_v44 = vld [vmem:[#allocation10] sm:$0xff] }
  0x37   :  { %194 = vmatpush.msra.mxu1 %v158_v33  ;;  %v356_v33 = vld [vmem:[#allocation10 + $0x48] sm:$0xff] }
  0x38   :  { %230 = vmatpush.msra.mxu2 %v209_v45  ;;  %v408_v45 = vld [vmem:[#allocation10 + $0xf8] sm:$0xff] }
  0x39   :  { %367 = vmatpush.msrb.mxu1 %v362_v27 }
  0x3a   :  { %231 = vmatpush.msra.mxu2 %v208_v48  ;;  %v405_v48 = vld [vmem:[#allocation10 + $0xe0] sm:$0xff] }
  0x3b   :  { %368 = vmatpush.msrb.mxu1 %v361_v28 }
  0x3c   :  { %232 = vmatpush.msra.mxu2 %v207_v50  ;;  %v403_v50 = vld [vmem:[#allocation10 + $0xd0] sm:$0xff] }
  0x3d   :  { %369 = vmatpush.msrb.mxu1 %v360_v29 }
  0x3e   :  { %151 = vmatmul.f32.gmra.mxu0 %v111_v30  ;;  %233 = vmatpush.msra.mxu2 %v206_v54  ;;  %v359_v30 = vld [vmem:[#allocation10 + $0x60] sm:$0xff]  ;;  %v399_v54 = vld [vmem:[#allocation10 + $0xb0] sm:$0xff] }
  0x3f   :  { %370 = vmatpush.msrb.mxu1 %v359_v30 }
  0x40   :  { %234 = vmatpush.msra.mxu2 %v205_v55  ;;  %v494_v55 = vld [vmem:[%s773_s5 + $0x1] ss:$0 sm:$0xff] }
  0x41   :  { %371 = vmatpush.msrb.mxu1 %v358_v31 }
  0x42   :  { %235 = vmatpush.msra.mxu2 %v204_v56  ;;  %v398_v56 = vld [vmem:[#allocation10 + $0xa8] sm:$0xff] }
  0x43   :  { %372 = vmatpush.msrb.mxu1 %v357_v32 }
  0x44   :  { %414 = vmatpush.msrb.mxu2 %v408_v45 }
  0x45   :  { %373 = vmatpush.msrb.mxu1 %v356_v33 }
  0x47   :  { %374 = vmatpush.msrb.mxu1 %v355_v35 }
  0x49   :  { %375 = vmatpush.msrb.mxu1 %v354_v36 }
  0x4b   :  { %376 = vmatpush.msrb.mxu1 %v353_v37 }
  0x4d   :  { %377 = vmatpush.msrb.mxu1 %v352_v38 }
  0x4f   :  { %378 = vmatpush.msrb.mxu1 %v351_v40 }
  0x51   :  { %379 = vmatpush.msrb.mxu1 %v350_v41 }
  0x53   :  { %380 = vmatpush.msrb.mxu1 %v349_v42 }
  0xb3   :  { %v149_v46 = vpop.f32.mrf.mxu0 }
  0xb4   :  { %v150_v47 = vadd.f32 %v491_v43, %v149_v46  ;;  %v407_v46 = vld [vmem:[#allocation10 + $0xf0] sm:$0xff] }
  0xb5   :  { %415 = vmatpush.msrb.mxu2 %v407_v46 }
  0xb6   :  { %v155_v49 = vmax.f32 %v150_v47, 0.0  ;;  %v406_v47 = vld [vmem:[#allocation10 + $0xe8] sm:$0xff] }
  0xb7   :  { %416 = vmatpush.msrb.mxu2 %v406_v47 }
  0xb8   :  { %195 = vmatmul.f32.vlgmr.msra.gmra.mxu1 %v155_v49  ;;  %v404_v49 = vld [vmem:[#allocation10 + $0xd8] sm:$0xff] }
  0xb9   :  { %417 = vmatpush.msrb.mxu2 %v405_v48 }
  0xbb   :  { %v152_v51 = vpop.f32.mrf.mxu0  ;;  %418 = vmatpush.msrb.mxu2 %v404_v49 }
  0xbc   :  { %v153_v52 = vadd.f32 %v491_v43, %v152_v51  ;;  %v348_v43 = vld [vmem:[#allocation10 + $0x8] sm:$0xff] }
  0xbd   :  { %381 = vmatpush.msrb.mxu1 %v348_v43  ;;  %v402_v51 = vld [vmem:[#allocation10 + $0xc8] sm:$0xff]  ;;  %419 = vmatpush.msrb.mxu2 %v403_v50 }
  0xbe   :  { %v156_v53 = vmax.f32 %v153_v52, 0.0  ;;  %v401_v52 = vld [vmem:[#allocation10 + $0xc0] sm:$0xff] }
  0xbf   :  { %382 = vmatpush.msrb.mxu1 %v347_v44  ;;  %420 = vmatpush.msrb.mxu2 %v402_v51 }
  0xc0   :  { %198 = vmatmul.f32.gmra.mxu1 %v156_v53  ;;  %v400_v53 = vld [vmem:[#allocation10 + $0xb8] sm:$0xff] }
  0xc1   :  { %421 = vmatpush.msrb.mxu2 %v401_v52 }
  0xc3   :  { %422 = vmatpush.msrb.mxu2 %v400_v53 }
  0xc5   :  { %423 = vmatpush.msrb.mxu2 %v399_v54 }
  0xc7   :  { %424 = vmatpush.msrb.mxu2 %v398_v56 }
 0x135   :  { %v196_v58 = vpop.f32.mrf.mxu1 }
 0x136   :  { %v197_v59 = vadd.f32 %v492_v57, %v196_v58 }
 0x138   :  { %v202_v60 = vmax.f32 %v197_v59, 0.0 }
 0x13a   :  { %236 = vmatmul.f32.vlgmr.msra.gmra.mxu2 %v202_v60  ;;  %v396_v60 = vld [vmem:[#allocation10 + $0x98] sm:$0xff] }
 0x13d   :  { %v199_v61 = vpop.f32.mrf.mxu1 }
 0x13e   :  { %v200_v62 = vadd.f32 %v492_v57, %v199_v61  ;;  %v397_v57 = vld [vmem:[#allocation10 + $0xa0] sm:$0xff] }
 0x13f   :  { %425 = vmatpush.msrb.mxu2 %v397_v57 }
 0x140   :  { %v203_v63 = vmax.f32 %v200_v62, 0.0 }
 0x141   :  { %426 = vmatpush.msrb.mxu2 %v396_v60 }
 0x142   :  { %239 = vmatmul.f32.gmra.mxu2 %v203_v63  ;;  %v395_v63 = vld [vmem:[#allocation10 + $0x90] sm:$0xff] }
 0x143   :  { %427 = vmatpush.msrb.mxu2 %v395_v63 }
 0x1bd   :  { %v237_v0 = vpop.f32.mrf.mxu2 }
 0x1c5   :  { %v240_v1 = vpop.f32.mrf.mxu2 }
 0x1c6   :  { %268 = vmatpush.msra.mxu3 %v240_v1  ;;  %v393_v1 = vld [vmem:[#allocation10 + $0x80] sm:$0xff] }
 0x1c8   :  { %269 = vmatpush.msra.mxu3 %v237_v0  ;;  %v394_v0 = vld [vmem:[#allocation10 + $0x88] sm:$0xff] }
 0x1c9   :  { %461 = vmatmul.msk.f32.vlgmr.msra.gmra.mxu3 %vm247_vm0, %v738_v2  ;;  %428 = vmatpush.msrb.mxu2 %v394_v0 }
 0x1ca   :  { %296 = vmatpush.msrb.mxu3 %v295_v3 }
 0x1cb   :  { %429 = vmatpush.msrb.mxu2 %v393_v1 }
 0x1cc   :  { %297 = vmatpush.msrb.mxu3 %v294_v4 }
 0x1ce   :  { %298 = vmatpush.msrb.mxu3 %v293_v5 }
 0x1d0   :  { %299 = vmatpush.msrb.mxu3 %v292_v6 }
 0x1d1   :  { %462 = vmatmul.msk.f32.gmra.mxu3 %vm247_vm0, %v742_v7 }
 0x1d2   :  { %300 = vmatpush.msrb.mxu3 %v291_v8 }
 0x1d4   :  { %301 = vmatpush.msrb.mxu3 %v290_v9  ;;  %v496_v9 = vld [vmem:[%s775_s7 + $0x1] ss:$0 sm:$0xff] }
 0x1d6   :  { %302 = vmatpush.msrb.mxu3 %v289_v10 }
 0x1d8   :  { %303 = vmatpush.msrb.mxu3 %v288_v11 }
 0x1da   :  { %304 = vmatpush.msrb.mxu3 %v287_v12 }
 0x1dc   :  { %305 = vmatpush.msrb.mxu3 %v286_v13 }
 0x1de   :  { %306 = vmatpush.msrb.mxu3 %v285_v14 }
 0x1e0   :  { %307 = vmatpush.msrb.mxu3 %v284_v15 }
 0x1e2   :  { %308 = vmatpush.msrb.mxu3 %v283_v16 }
 0x1e4   :  { %309 = vmatpush.msrb.mxu3 %v282_v17 }
 0x1e6   :  { %310 = vmatpush.msrb.mxu3 %v281_v18 }
 0x1e8   :  { %311 = vmatpush.msrb.mxu3 %v280_v19 }
 0x1ea   :  { %467 = vmatpush.msra.mxu3 %v362_v27 }
 0x1ec   :  { %468 = vmatpush.msra.mxu3 %v361_v28 }
 0x1ee   :  { %469 = vmatpush.msra.mxu3 %v360_v29 }
 0x1f0   :  { %470 = vmatpush.msra.mxu3 %v359_v30 }
 0x1f2   :  { %471 = vmatpush.msra.mxu3 %v358_v31 }
 0x1f4   :  { %472 = vmatpush.msra.mxu3 %v357_v32 }
 0x1f6   :  { %473 = vmatpush.msra.mxu3 %v356_v33 }
 0x1f8   :  { %474 = vmatpush.msra.mxu3 %v355_v35 }
 0x1fa   :  { %475 = vmatpush.msra.mxu3 %v354_v36 }
 0x1fc   :  { %476 = vmatpush.msra.mxu3 %v353_v37 }
 0x1fe   :  { %477 = vmatpush.msra.mxu3 %v352_v38 }
 0x200   :  { %478 = vmatpush.msra.mxu3 %v351_v40 }
 0x202   :  { %479 = vmatpush.msra.mxu3 %v350_v41 }
 0x204   :  { %480 = vmatpush.msra.mxu3 %v349_v42 }
 0x206   :  { %481 = vmatpush.msra.mxu3 %v348_v43 }
 0x208   :  { %482 = vmatpush.msra.mxu3 %v347_v44 }
 0x24c   :  { %v271_v21 = vpop.f32.mrf.mxu3 }
 0x24d   :  { %v272_v22 = vadd.f32 %v493_v20, %v271_v21 }
 0x24f   :  { %v277_v23 = vmax.f32 %v272_v22, 0.0 }
 0x251   :  { %312 = vmatmul.f32.vlgmr.msrb.gmra.mxu3 %v277_v23 }
 0x254   :  { %v274_v24 = vpop.f32.mrf.mxu3 }
 0x255   :  { %v275_v25 = vadd.f32 %v493_v20, %v274_v24 }
 0x257   :  { %v278_v26 = vmax.f32 %v275_v25, 0.0 }
 0x259   :  { %315 = vmatmul.f32.gmra.mxu3 %v278_v26 }
 0x2d4   :  { %v313_v34 = vpop.f32.mrf.mxu3 }
 0x2dc   :  { %v316_v39 = vpop.f32.mrf.mxu3 }
 0x2dd   :  { %338 = vmatpush.msrb.mxu0 %v316_v39 }
 0x2df   :  { %339 = vmatpush.msrb.mxu0 %v313_v34 }
 0x2e0   :  { %464 = vmatmul.msk.f32.vlgmr.msrb.gmra.mxu0 %vm247_vm0, %v738_v2  ;;  %v495_v2 = vld [vmem:[%s775_s7] ss:$0 sm:$0xff] }
 0x2e8   :  { %465 = vmatmul.msk.f32.gmra.mxu0 %vm247_vm0, %v742_v7 }
 0x35d   :  { %v341_v58 = vpop.f32.mrf.mxu0 }
 0x35e   :  { %v342_v59 = vadd.f32 %v494_v55, %v341_v58 }
 0x360   :  { %383 = vmatmul.f32.vlgmr.msrb.gmra.mxu1 %v342_v59 }
 0x365   :  { %v344_v61 = vpop.f32.mrf.mxu0 }
 0x366   :  { %v345_v62 = vadd.f32 %v494_v55, %v344_v61 }
 0x368   :  { %386 = vmatmul.f32.vlgmr.msra.gmra.mxu3 %v345_v62 }
 0x3dd   :  { %v384_v3 = vpop.f32.mrf.mxu1 }
 0x3de   :  { %v385_v4 = vadd.f32 %v495_v2, %v384_v3 }
 0x3e0   :  { %v390_v5 = vmax.f32 %v385_v4, 0.0 }
 0x3e2   :  { %430 = vmatmul.f32.vlgmr.msrb.gmra.mxu2 %v390_v5 }
 0x3eb   :  { %v387_v6 = vpop.f32.mrf.mxu3 }
 0x3ec   :  { %v388_v7 = vadd.f32 %v495_v2, %v387_v6 }
 0x3ee   :  { %v391_v8 = vmax.f32 %v388_v7, 0.0 }
 0x3f0   :  { %433 = vmatmul.f32.gmra.mxu2 %v391_v8 }
 0x465   :  { %v431_v10 = vpop.f32.mrf.mxu2 }
 0x466   :  { %v432_v11 = vadd.f32 %v496_v9, %v431_v10 }
 0x468   :  { %437 = vst [vmem:[#allocation11] sm:$0xff] %v432_v11 }
 0x473   :  { %v434_v12 = vpop.f32.mrf.mxu2 }
 0x474   :  { %v435_v13 = vadd.f32 %v496_v9, %v434_v12 }
 0x476   :  { %438 = vst [vmem:[#allocation11 + $0x8] sm:$0xff] %v435_v13 }
 0x477   :  { %451 = dma.vmem_to_hbm [thread:$0]  %s444_s18, 256, %s446_s19, [#allocation4], %s650_s13, %s650_s13, %s651_s14  }
 0x478   :  { %647 = dma.done.wait [#allocation4], 256  }
 0x479   :  { %648 = vsyncadd [#allocation4], 4294967040 }
 0x47a   :  { %456 = vsyncpa [#allocation3], 1 }
 0x47b   :  { %457 = vsyncpa [#allocation6], 1 }
 0x47c   :  { %458 = vsyncpa [#allocation9], 1 }
 0x47d   :  { %459 = vsyncpa [#allocation4], 1 }

</bundles_post_ra>
